<compile_context>
chip_gen: v5e
topology: v5e:2x2
jax: 0.10.0
libtpu: 0.0.40
codegen_flags: <defaults>
</compile_context>

<pallas_src>
import math
import functools

import jax
import jax.numpy as jnp
from jax.experimental import pallas as pl
from jax.experimental.pallas import tpu as pltpu


def _round_up(v, m):
    return ((v + m - 1) // m) * m


def _vmem_caps():
    """(tile-selection budget, vmem_limit clamp) in bytes, per TPU generation."""
    phys = None
    try:
        info = pltpu.get_tpu_info()
        phys = getattr(info, "vmem_capacity_bytes", None)
    except Exception:
        phys = None
    if not phys:
        phys = 64 << 20                  # conservative default (v7x-class)
    if phys <= (64 << 20):               # v7x: 64 MiB physical VMEM
        return 36 << 20, 48 << 20
    return 80 << 20, 100 << 20           # v5e / v6e: 128 MiB physical VMEM


def _select_tiles(N_pad, F_pad, gb, xb, ob, acc_b, budget, allow_resident=True):
    """Pick (mode, tm, tk, tn).  mode in {"resident", "tiled"}."""
    tm_cands = [c for c in (1024, 512, 256, 128) if N_pad % c == 0]
    # Keep >= 2 blocks on the parallel i axis when possible (v7x: 2 TCs).
    tm_par = [c for c in tm_cands if N_pad // c >= 2] or tm_cands

    if allow_resident:
        # Path A: x fully VMEM-resident; single HBM pass over both G and x.
        for tm in tm_par:
            for tk in tm_cands:
                use = (2 * N_pad * F_pad * xb        # resident x (dbl-buffered spec)
                       + 2 * tm * tk * gb            # G tiles
                       + 2 * tm * F_pad * ob         # output block
                       + tm * F_pad * acc_b)         # f32 scratch (non-f32 out)
                if use <= budget:
                    return "resident", tm, tk, F_pad

    # Path B: general 3-D tiling.  Widest tn first (G read ceil(F/tn) times);
    # prefer shrinking tm/tk over splitting F.  Large tm cuts x re-reads.
    tn_cands = [F_pad] + [c for c in (1024, 512, 256, 128)
                          if F_pad % c == 0 and c < F_pad]
    tk_cands = [c for c in tm_cands if c <= 512]
    for tn in tn_cands:
        for tm in tm_par:
            for tk in tk_cands:
                use = (2 * tm * tk * gb + 2 * tk * tn * xb + 2 * tm * tn * xb
                       + 2 * tm * tn * ob + tm * tn * acc_b)
                if use <= budget:
                    return "tiled", tm, tk, tn
    return "tiled", 128, 128, 128


# ---------------------------------------------------------------------------
# Kernels — "resident x" path: grid (i, k), x fully in VMEM.
# ---------------------------------------------------------------------------
def _kernel_resident_f32(g_ref, x_ref, o_ref):
    i = pl.program_id(0)
    k = pl.program_id(1)
    tm = o_ref.shape[0]
    tk = g_ref.shape[1]

    @pl.when(k == 0)
    def _():
        # Fold the residual "+ x" into the accumulator init.
        row = pl.multiple_of(i * tm, tm)
        o_ref[...] = x_ref[pl.ds(row, tm), :].astype(jnp.float32)

    col = pl.multiple_of(k * tk, tk)
    o_ref[...] += jnp.dot(g_ref[...], x_ref[pl.ds(col, tk), :],
                          preferred_element_type=jnp.float32)


def _kernel_resident_acc(g_ref, x_ref, o_ref, acc_ref):
    i = pl.program_id(0)
    k = pl.program_id(1)
    tm = o_ref.shape[0]
    tk = g_ref.shape[1]

    @pl.when(k == 0)
    def _():
        row = pl.multiple_of(i * tm, tm)
        acc_ref[...] = x_ref[pl.ds(row, tm), :].astype(jnp.float32)

    col = pl.multiple_of(k * tk, tk)
    acc_ref[...] += jnp.dot(g_ref[...], x_ref[pl.ds(col, tk), :],
                            preferred_element_type=jnp.float32)

    @pl.when(k == pl.num_programs(1) - 1)
    def _():
        o_ref[...] = acc_ref[...].astype(o_ref.dtype)


# ---------------------------------------------------------------------------
# Kernels — general tiled path: grid (i, j, k), decoupled tm / tk; x is passed
# twice: once as the (k, j) matmul operand, once as the (i, j) residual block.
# ---------------------------------------------------------------------------
def _kernel_tiled_f32(g_ref, xk_ref, xr_ref, o_ref):
    k = pl.program_id(2)

    @pl.when(k == 0)
    def _():
        o_ref[...] = xr_ref[...].astype(jnp.float32)   # residual fold

    o_ref[...] += jnp.dot(g_ref[...], xk_ref[...],
                          preferred_element_type=jnp.float32)


def _kernel_tiled_acc(g_ref, xk_ref, xr_ref, o_ref, acc_ref):
    k = pl.program_id(2)

    @pl.when(k == 0)
    def _():
        acc_ref[...] = xr_ref[...].astype(jnp.float32)

    acc_ref[...] += jnp.dot(g_ref[...], xk_ref[...],
                            preferred_element_type=jnp.float32)

    @pl.when(k == pl.num_programs(2) - 1)
    def _():
        o_ref[...] = acc_ref[...].astype(o_ref.dtype)


@functools.partial(jax.jit, static_argnames=("stream_bf16", "force_tiled"))
def hgnn_conv_forward(x, G, *, stream_bf16=False, force_tiled=False):
    """z = G @ x + x via a Pallas matmul kernel with fused residual."""
    N, F = x.shape
    assert G.shape == (N, N)
    out_dtype = x.dtype

    # Wrapper-side zero padding to 128-aligned, lane-dense shapes.  Padding is
    # exact: padded rows/cols of G and rows of x are zero, so the top-left
    # (N, F) block of the padded result equals G @ x + x.
    N_pad = _round_up(N, 128)
    F_pad = _round_up(F, 128)
    if (N_pad, F_pad) != (N, F):
        x_p = jnp.pad(x, ((0, N_pad - N), (0, F_pad - F)))
        G_p = jnp.pad(G, ((0, N_pad - N), (0, N_pad - N)))
    else:
        x_p, G_p = x, G

    # Optional bf16 operand streaming (halves HBM bytes; native bf16 MXU rate
    # on all generations).  Accumulation stays f32.  Changes numerics -> flag.
    if stream_bf16:
        G_op = G_p.astype(jnp.bfloat16)
        x_op = x_p.astype(jnp.bfloat16)
    else:
        G_op, x_op = G_p, x_p

    gb = jnp.dtype(G_op.dtype).itemsize
    xb = jnp.dtype(x_op.dtype).itemsize
    ob = jnp.dtype(out_dtype).itemsize
    out_is_f32 = out_dtype == jnp.float32
    acc_b = 0 if out_is_f32 else 4

    budget, clamp = _vmem_caps()
    mode, tm, tk, tn = _select_tiles(
        N_pad, F_pad, gb, xb, ob, acc_b, budget,
        allow_resident=not force_tiled)

    if mode == "resident":
        grid = (N_pad // tm, N_pad // tk)
        in_specs = [
            pl.BlockSpec((tm, tk), lambda i, k: (i, k)),        # G tile
            pl.BlockSpec((N_pad, F_pad), lambda i, k: (0, 0)),  # x, resident
        ]
        out_specs = pl.BlockSpec((tm, F_pad), lambda i, k: (i, 0))
        dims = ("parallel", "arbitrary")
        kernel = _kernel_resident_f32 if out_is_f32 else _kernel_resident_acc
        scratch = [] if out_is_f32 else [pltpu.VMEM((tm, F_pad), jnp.float32)]
        operands = (G_op, x_op)
        vmem_use = (2 * tm * tk * gb + 2 * N_pad * F_pad * xb
                    + 2 * tm * F_pad * ob + tm * F_pad * acc_b)
        g_reads, x_reads = 1, 1
    else:
        grid = (N_pad // tm, F_pad // tn, N_pad // tk)
        in_specs = [
            pl.BlockSpec((tm, tk), lambda i, j, k: (i, k)),  # G tile
            pl.BlockSpec((tk, tn), lambda i, j, k: (k, j)),  # x, matmul operand
            pl.BlockSpec((tm, tn), lambda i, j, k: (i, j)),  # x, residual block
        ]
        out_specs = pl.BlockSpec((tm, tn), lambda i, j, k: (i, j))
        dims = ("parallel", "parallel", "arbitrary")
        kernel = _kernel_tiled_f32 if out_is_f32 else _kernel_tiled_acc
        scratch = [] if out_is_f32 else [pltpu.VMEM((tm, tn), jnp.float32)]
        operands = (G_op, x_op, x_op)
        vmem_use = (2 * tm * tk * gb + 2 * tk * tn * xb + 2 * tm * tn * xb
                    + 2 * tm * tn * ob + tm * tn * acc_b)
        g_reads = F_pad // tn            # G re-streamed per j block
        x_reads = N_pad // tm + 1        # matmul-stream re-reads + residual

    vmem_limit = int(min(max(int(1.5 * vmem_use), 16 << 20), clamp))

    cost = pl.CostEstimate(
        flops=2 * N_pad * N_pad * F_pad + N_pad * F_pad,
        transcendentals=0,
        bytes_accessed=(g_reads * N_pad * N_pad * gb
                        + x_reads * N_pad * F_pad * xb
                        + N_pad * F_pad * ob),
    )

    z_pad = pl.pallas_call(
        kernel,
        out_shape=jax.ShapeDtypeStruct((N_pad, F_pad), out_dtype),
        grid_spec=pltpu.PrefetchScalarGridSpec(
            num_scalar_prefetch=0,
            grid=grid,
            in_specs=in_specs,
            out_specs=out_specs,
            scratch_shapes=scratch,
        ),
        compiler_params=pltpu.CompilerParams(
            dimension_semantics=dims,
            vmem_limit_bytes=vmem_limit,
        ),
        cost_estimate=cost,
    )(*operands)

    if (N_pad, F_pad) != (N, F):
        z_pad = z_pad[:N, :F]
    return z_pad


class HGNNConvParams:
    """Deterministic init matching the PyTorch module's __init__ (weight/bias
    are unused by forward, kept only for shape parity)."""

    def __init__(self, in_ft, out_ft, key, bias=True):
        stdv = 1.0 / math.sqrt(out_ft)
        kw, kb = jax.random.split(key)
        self.weight = jax.random.uniform(
            kw, (in_ft, out_ft), minval=-stdv, maxval=stdv, dtype=jnp.float32
        )
        self.bias = (
            jax.random.uniform(
                kb, (out_ft,), minval=-stdv, maxval=stdv, dtype=jnp.float32
            )
            if bias
            else None
        )


if __name__ == "__main__":
    key = jax.random.PRNGKey(0)
    k_x, k_g, k_p = jax.random.split(key, 3)

    N = 200       # number of nodes (deliberately not a 128 multiple -> padding path)
    IN_FT = 96    # input feature dim (padded to 128 lanes)
    OUT_FT = 64   # out_ft (only affects the unused weight/bias shapes)

    # Parameters (unused in forward, initialized for parity with nn.Module).
    params = HGNNConvParams(IN_FT, OUT_FT, k_p, bias=True)

    x = jax.random.normal(k_x, (N, IN_FT), dtype=jnp.float32)
    G = jax.random.normal(k_g, (N, N), dtype=jnp.float32)

    z_ref = G @ x + x

    # 1) Default path: at this size x is kept fully VMEM-resident.  Exact f32.
    z = jax.block_until_ready(hgnn_conv_forward(x, G))
    assert z.shape == (N, IN_FT)
    assert jnp.allclose(z, z_ref, atol=1e-3, rtol=1e-3)

    # 2) General 3-D-tiled path (what large N / F would select).  Exact f32.
    z_t = jax.block_until_ready(hgnn_conv_forward(x, G, force_tiled=True))
    assert jnp.allclose(z_t, z_ref, atol=1e-3, rtol=1e-3)

    # 3) bf16 operand-streaming path (halves HBM traffic; looser tolerance).
    z_bf = jax.block_until_ready(hgnn_conv_forward(x, G, stream_bf16=True))
    assert jnp.allclose(z_bf, z_ref, atol=0.5, rtol=0.05)

    print("KERNEL_OK")
</pallas_src>

<mosaic_0001>
module attributes {stable_mosaic.version = 11 : i64} {
  func.func @_kernel_resident_f32(%arg0: i32, %arg1: i32, %arg2: memref<128x256xf32, #tpu.memory_space<vmem>>, %arg3: memref<256x128xf32, #tpu.memory_space<vmem>>, %arg4: memref<128x128xf32, #tpu.memory_space<vmem>>) attributes {dimension_semantics = [#tpu.dimension_semantics<parallel>, #tpu.dimension_semantics<arbitrary>], iteration_bounds = array<i64: 2, 1>, scalar_prefetch = 0 : i64, scratch_operands = 0 : i64, tpu.core_type = #tpu.core_type<tc>, window_params = [{transform_indices = @transform_0, window_bounds = array<i64: 128, 256>}, {pipeline_mode = #tpu.pipeline_mode<synchronous>, transform_indices = @transform_1, window_bounds = array<i64: 256, 128>}, {transform_indices = @transform_2, window_bounds = array<i64: 128, 128>}]} {
    %c0_i32 = arith.constant 0 : i32
    %0 = arith.cmpi eq, %arg1, %c0_i32 : i32
    %1 = arith.extui %0 : i1 to i32
    %c0_i32_0 = arith.constant 0 : i32
    %2 = arith.cmpi ne, %1, %c0_i32_0 : i32
    scf.if %2 {
      %c128_i32 = arith.constant 128 : i32
      %12 = arith.muli %arg0, %c128_i32 : i32
      %13 = tpu.assume_multiple %12, 128 : i32
      %14 = arith.index_cast %13 : i32 to index
      %c0_7 = arith.constant 0 : index
      %15 = vector.load %arg3[%14, %c0_7] : memref<256x128xf32, #tpu.memory_space<vmem>>, vector<128x128xf32>
      %c0_8 = arith.constant 0 : index
      %c0_9 = arith.constant 0 : index
      %16 = vector.load %arg4[%c0_8, %c0_9] : memref<128x128xf32, #tpu.memory_space<vmem>>, vector<128x128xf32>
      tpu.vector_store %arg4[%c0_8, %c0_9], %15 {strides = array<i32>} : memref<128x128xf32, #tpu.memory_space<vmem>>, vector<128x128xf32>,
    } else {
    }
    %c256_i32 = arith.constant 256 : i32
    %3 = arith.muli %arg1, %c256_i32 : i32
    %4 = tpu.assume_multiple %3, 256 : i32
    %c0 = arith.constant 0 : index
    %c0_1 = arith.constant 0 : index
    %5 = vector.load %arg4[%c0, %c0_1] : memref<128x128xf32, #tpu.memory_space<vmem>>, vector<128x128xf32>
    %c0_2 = arith.constant 0 : index
    %c0_3 = arith.constant 0 : index
    %6 = vector.load %arg2[%c0_2, %c0_3] : memref<128x256xf32, #tpu.memory_space<vmem>>, vector<128x256xf32>
    %7 = arith.index_cast %4 : i32 to index
    %c0_4 = arith.constant 0 : index
    %8 = vector.load %arg3[%7, %c0_4] : memref<256x128xf32, #tpu.memory_space<vmem>>, vector<256x128xf32>
    %cst = arith.constant dense<0.000000e+00> : vector<128x128xf32>
    %9 = tpu.matmul %6, %8, %cst {dimension_numbers = #tpu.dot_dimension_numbers<[1], [0], [0], [1], [0, 0, 1, 1], [], []>} : vector<128x256xf32>, vector<256x128xf32>, vector<128x128xf32> -> vector<128x128xf32>
    %10 = arith.addf %5, %9 : vector<128x128xf32>
    %c0_5 = arith.constant 0 : index
    %c0_6 = arith.constant 0 : index
    %11 = vector.load %arg4[%c0_5, %c0_6] : memref<128x128xf32, #tpu.memory_space<vmem>>, vector<128x128xf32>
    tpu.vector_store %arg4[%c0_5, %c0_6], %10 {strides = array<i32>} : memref<128x128xf32, #tpu.memory_space<vmem>>, vector<128x128xf32>,
    return
  }
  func.func @transform_0(%arg0: i32, %arg1: i32) -> (i32, i32) {
    %c0_i32 = arith.constant 0 : i32
    return %arg0, %arg1 : i32, i32
  }
  func.func @transform_1(%arg0: i32, %arg1: i32) -> (i32, i32) {
    %c0_i32 = arith.constant 0 : i32
    %c0_i32_0 = arith.constant 0 : i32
    %c0_i32_1 = arith.constant 0 : i32
    return %c0_i32, %c0_i32_0 : i32, i32
  }
  func.func @transform_2(%arg0: i32, %arg1: i32) -> (i32, i32) {
    %c0_i32 = arith.constant 0 : i32
    %c0_i32_0 = arith.constant 0 : i32
    return %arg0, %c0_i32 : i32, i32
  }
}

</mosaic_0001>

<bundles_post_ra>
// kernel: hgnn_conv_forward.1
= control target key start
LH: loop header
LB: loop body
LE: loop exit
PB: predicated region body
PF: predicated region fallthrough
CT: control target
= control target key end

     0   :  { %s644_s9 = smov 0   ;;  %s646_s10 = smov 0   ;;  %s854_s0 = inlined_call_operand.vmem [shape: f32[256,256], index: 0, kind: input, shape index: {}]   ;;  %s855_s1 = inlined_call_operand.vmem [shape: f32[256,128], index: 1, kind: input, shape index: {}]   ;;  %s856_s2 = inlined_call_operand.vmem [shape: f32[256,128], index: 2, kind: output, shape index: {}]  }
   0x1   :  { %s648_s11 = smov 0  }
   0x2 LB: > { %s24_s12 = sadd.s32 1, %s623_s10  ;;  %p539_p0 = scmp.ge.s32.totalorder %s627_s11, 1  ;;  %s627_s11 = sphi %s648_s11, %s12_s11   ;;  %s623_s10 = sphi %s646_s10, %s858_s10   ;;  %s619_s9 = sphi %s644_s9, %s857_s9  }
   0x3   : > { %p26_p1 = scmp.ge.s32.totalorder %s24_s12, 2  ;;  %p133_p2 = scmp.lt.s32.totalorder %s627_s11, 3 }
   0x5   : > { %s860_s12 = smov (%p26_p1, %s24_s12), 0  ;;  %p134_p3 = pnand %p539_p0, %p133_p2 }
   0x6   : > { %s540_s21 = sshll.u32 (!%p134_p3), %s619_s9, 4  ;;  %s545_s7 = sshll.u32 (!%p134_p3), %s619_s9, 7 }
   0x7   : > { %137 = sbr.rel (%p134_p3) target bundleno = 238 (0xee), region = 28  ;;  %p162_p4 = scmp.lt.s32.totalorder (!%p134_p3), %s540_s21, 31 }
   0x8   : > { %s805_s14 = scalar_lea.vmem (!%p134_p3), %s855_s1, %s545_s7 }
   0xc   : > { %v281_v0 = vld [vmem:[%s855_s1 + $0x78] sm:$0xff]  ;;  %v280_v2 = vld [vmem:[%s855_s1 + $0x70] sm:$0xff]  ;;  %v279_v4 = vld [vmem:[%s855_s1 + $0x68] sm:$0xff]  ;;  %s862_s21 = smov (!%p162_p4, %s540_s21), 31 }
   0xd   : > { %v297_v1 = vld [vmem:[%s855_s1 + $0xf8] sm:$0xff]  ;;  %549 = vmatpush.msra.mxu2 %v281_v0  ;;  %v296_v3 = vld [vmem:[%s855_s1 + $0xf0] sm:$0xff]  ;;  %v295_v5 = vld [vmem:[%s855_s1 + $0xe8] sm:$0xff]  ;;  %298 = vmatpush.msra.mxu0 %v281_v0  ;;  %s548_s18 = sshll.u32 %s862_s21, 4  ;;  %s544_s15 = sshll.u32 %s862_s21, 3 }
   0xe   : > { %565 = vmatpush.msra.mxu3 %v297_v1  ;;  %363 = vmatpush.msra.mxu1 %v297_v1  ;;  %v278_v6 = vld [vmem:[%s855_s1 + $0x60] sm:$0xff]  ;;  %v277_v8 = vld [vmem:[%s855_s1 + $0x58] sm:$0xff]  ;;  %v276_v10 = vld [vmem:[%s855_s1 + $0x50] sm:$0xff]  ;;  %s761_s30 = scalar_lea.vmem %s854_s0, %s548_s18  ;;  %s812_s18 = scalar_lea.vmem %s856_s2, %s544_s15 }
   0xf   : > { %550 = vmatpush.msra.mxu2 %v280_v2  ;;  %v294_v7 = vld [vmem:[%s855_s1 + $0xe0] sm:$0xff]  ;;  %299 = vmatpush.msra.mxu0 %v280_v2  ;;  %v293_v9 = vld [vmem:[%s855_s1 + $0xd8] sm:$0xff]  ;;  %v292_v11 = vld [vmem:[%s855_s1 + $0xd0] sm:$0xff] }
  0x10   : > { %566 = vmatpush.msra.mxu3 %v296_v3  ;;  %364 = vmatpush.msra.mxu1 %v296_v3  ;;  %v275_v12 = vld [vmem:[%s855_s1 + $0x48] sm:$0xff]  ;;  %v274_v14 = vld [vmem:[%s855_s1 + $0x40] sm:$0xff]  ;;  %v273_v16 = vld [vmem:[%s855_s1 + $0x38] sm:$0xff] }
  0x11   : > { %551 = vmatpush.msra.mxu2 %v279_v4  ;;  %300 = vmatpush.msra.mxu0 %v279_v4  ;;  %v291_v13 = vld [vmem:[%s855_s1 + $0xc8] sm:$0xff]  ;;  %v290_v15 = vld [vmem:[%s855_s1 + $0xc0] sm:$0xff]  ;;  %v289_v17 = vld [vmem:[%s855_s1 + $0xb8] sm:$0xff] }
  0x12   : > { %567 = vmatpush.msra.mxu3 %v295_v5  ;;  %365 = vmatpush.msra.mxu1 %v295_v5  ;;  %v272_v18 = vld [vmem:[%s855_s1 + $0x30] sm:$0xff]  ;;  %v271_v20 = vld [vmem:[%s855_s1 + $0x28] sm:$0xff]  ;;  %v270_v22 = vld [vmem:[%s855_s1 + $0x20] sm:$0xff] }
  0x13   : > { %552 = vmatpush.msra.mxu2 %v278_v6  ;;  %301 = vmatpush.msra.mxu0 %v278_v6  ;;  %v288_v19 = vld [vmem:[%s855_s1 + $0xb0] sm:$0xff]  ;;  %v287_v21 = vld [vmem:[%s855_s1 + $0xa8] sm:$0xff]  ;;  %v286_v23 = vld [vmem:[%s855_s1 + $0xa0] sm:$0xff] }
  0x14   : > { %568 = vmatpush.msra.mxu3 %v294_v7  ;;  %366 = vmatpush.msra.mxu1 %v294_v7  ;;  %v269_v24 = vld [vmem:[%s855_s1 + $0x18] sm:$0xff]  ;;  %v268_v26 = vld [vmem:[%s855_s1 + $0x10] sm:$0xff]  ;;  %v267_v28 = vld [vmem:[%s855_s1 + $0x8] sm:$0xff] }
  0x15   : > { %553 = vmatpush.msra.mxu2 %v277_v8  ;;  %302 = vmatpush.msra.mxu0 %v277_v8  ;;  %v285_v25 = vld [vmem:[%s855_s1 + $0x98] sm:$0xff]  ;;  %v284_v27 = vld [vmem:[%s855_s1 + $0x90] sm:$0xff]  ;;  %v283_v29 = vld [vmem:[%s855_s1 + $0x88] sm:$0xff] }
  0x16   : > { %569 = vmatpush.msra.mxu3 %v293_v9  ;;  %367 = vmatpush.msra.mxu1 %v293_v9  ;;  %v266_v30 = vld [vmem:[%s855_s1] sm:$0xff]  ;;  %v250_v33 = vld [vmem:[%s761_s30 + $0x88] sm:$0xff]  ;;  %v251_v36 = vld [vmem:[%s761_s30 + $0x90] sm:$0xff] }
  0x17   : > { %554 = vmatpush.msra.mxu2 %v276_v10  ;;  %303 = vmatpush.msra.mxu0 %v276_v10  ;;  %v282_v31 = vld [vmem:[%s855_s1 + $0x80] sm:$0xff]  ;;  %v234_v35 = vld [vmem:[%s761_s30 + $0x8] sm:$0xff]  ;;  %v252_v37 = vld [vmem:[%s761_s30 + $0x98] sm:$0xff] }
  0x18   : > { %570 = vmatpush.msra.mxu3 %v292_v11  ;;  %368 = vmatpush.msra.mxu1 %v292_v11  ;;  %v249_v32 = vld [vmem:[%s761_s30 + $0x80] sm:$0xff]  ;;  %v235_v38 = vld [vmem:[%s761_s30 + $0x10] sm:$0xff]  ;;  %v236_v39 = vld [vmem:[%s761_s30 + $0x18] sm:$0xff] }
  0x19   : > { %555 = vmatpush.msra.mxu2 %v275_v12  ;;  %304 = vmatpush.msra.mxu0 %v275_v12  ;;  %v233_v34 = vld [vmem:[%s761_s30] sm:$0xff]  ;;  %v254_v41 = vld [vmem:[%s761_s30 + $0xa8] sm:$0xff]  ;;  %v255_v44 = vld [vmem:[%s761_s30 + $0xb0] sm:$0xff] }
  0x1a   : > { %571 = vmatpush.msra.mxu3 %v291_v13  ;;  %369 = vmatpush.msra.mxu1 %v291_v13  ;;  %v253_v40 = vld [vmem:[%s761_s30 + $0xa0] sm:$0xff]  ;;  %v238_v43 = vld [vmem:[%s761_s30 + $0x28] sm:$0xff]  ;;  %v256_v45 = vld [vmem:[%s761_s30 + $0xb8] sm:$0xff] }
  0x1b   : > { %556 = vmatpush.msra.mxu2 %v274_v14  ;;  %305 = vmatpush.msra.mxu0 %v274_v14  ;;  %v237_v42 = vld [vmem:[%s761_s30 + $0x20] sm:$0xff]  ;;  %v239_v46 = vld [vmem:[%s761_s30 + $0x30] sm:$0xff]  ;;  %v240_v47 = vld [vmem:[%s761_s30 + $0x38] sm:$0xff] }
  0x1c   : > { %572 = vmatpush.msra.mxu3 %v290_v15  ;;  %370 = vmatpush.msra.mxu1 %v290_v15  ;;  %v257_v48 = vld [vmem:[%s761_s30 + $0xc0] sm:$0xff]  ;;  %v258_v49 = vld [vmem:[%s761_s30 + $0xc8] sm:$0xff]  ;;  %v259_v52 = vld [vmem:[%s761_s30 + $0xd0] sm:$0xff] }
  0x1d   : > { %557 = vmatpush.msra.mxu2 %v273_v16  ;;  %306 = vmatpush.msra.mxu0 %v273_v16  ;;  %v241_v50 = vld [vmem:[%s761_s30 + $0x40] sm:$0xff]  ;;  %v242_v51 = vld [vmem:[%s761_s30 + $0x48] sm:$0xff]  ;;  %v260_v53 = vld [vmem:[%s761_s30 + $0xd8] sm:$0xff] }
  0x1e   : > { %573 = vmatpush.msra.mxu3 %v289_v17  ;;  %371 = vmatpush.msra.mxu1 %v289_v17  ;;  %v243_v54 = vld [vmem:[%s761_s30 + $0x50] sm:$0xff]  ;;  %v244_v55 = vld [vmem:[%s761_s30 + $0x58] sm:$0xff]  ;;  %v261_v56 = vld [vmem:[%s761_s30 + $0xe0] sm:$0xff] }
  0x1f   : > { %558 = vmatpush.msra.mxu2 %v272_v18  ;;  %307 = vmatpush.msra.mxu0 %v272_v18  ;;  %v262_v57 = vld [vmem:[%s761_s30 + $0xe8] sm:$0xff]  ;;  %v245_v58 = vld [vmem:[%s761_s30 + $0x60] sm:$0xff]  ;;  %v263_v60 = vld [vmem:[%s761_s30 + $0xf0] sm:$0xff] }
  0x20   : > { %574 = vmatpush.msra.mxu3 %v288_v19  ;;  %372 = vmatpush.msra.mxu1 %v288_v19  ;;  %v246_v59 = vld [vmem:[%s761_s30 + $0x68] sm:$0xff]  ;;  %v264_v61 = vld [vmem:[%s761_s30 + $0xf8] sm:$0xff]  ;;  %v247_v62 = vld [vmem:[%s761_s30 + $0x70] sm:$0xff] }
  0x21   : > { %559 = vmatpush.msra.mxu2 %v271_v20  ;;  %308 = vmatpush.msra.mxu0 %v271_v20  ;;  %v248_v63 = vld [vmem:[%s761_s30 + $0x78] sm:$0xff]  ;;  %v184_v1 = vld [vmem:[%s805_s14] sm:$0xff]  ;;  %v185_v11 = vld [vmem:[%s805_s14 + $0x8] sm:$0xff] }
  0x22   : > { %575 = vmatpush.msra.mxu3 %v287_v21  ;;  %373 = vmatpush.msra.mxu1 %v287_v21  ;;  %v192_v6 = vld [vmem:[%s805_s14 + $0x40] sm:$0xff]  ;;  %v193_v16 = vld [vmem:[%s805_s14 + $0x48] sm:$0xff]  ;;  %v186_v21 = vld [vmem:[%s805_s14 + $0x10] sm:$0xff] }
  0x23   : > { %560 = vmatpush.msra.mxu2 %v270_v22  ;;  %309 = vmatpush.msra.mxu0 %v270_v22 }
  0x24   : > { %576 = vmatpush.msra.mxu3 %v286_v23  ;;  %374 = vmatpush.msra.mxu1 %v286_v23 }
  0x25   : > { %561 = vmatpush.msra.mxu2 %v269_v24  ;;  %310 = vmatpush.msra.mxu0 %v269_v24 }
  0x26   : > { %577 = vmatpush.msra.mxu3 %v285_v25  ;;  %375 = vmatpush.msra.mxu1 %v285_v25 }
  0x27   : > { %562 = vmatpush.msra.mxu2 %v268_v26  ;;  %311 = vmatpush.msra.mxu0 %v268_v26  ;;  %v194_v26 = vld [vmem:[%s805_s14 + $0x50] sm:$0xff] }
  0x28   : > { %578 = vmatpush.msra.mxu3 %v284_v27  ;;  %376 = vmatpush.msra.mxu1 %v284_v27 }
  0x29   : > { %563 = vmatpush.msra.mxu2 %v267_v28  ;;  %312 = vmatpush.msra.mxu0 %v267_v28 }
  0x2a   : > { %579 = vmatpush.msra.mxu3 %v283_v29  ;;  %377 = vmatpush.msra.mxu1 %v283_v29 }
  0x2b   : > { %564 = vmatpush.msra.mxu2 %v266_v30  ;;  %313 = vmatpush.msra.mxu0 %v266_v30 }
  0x2c   : > { %580 = vmatpush.msra.mxu3 %v282_v31  ;;  %338 = vmatmul.f32.vlgmr.msra.gmra.mxu2 %v249_v32 }
  0x2d   : > { %403 = vmatmul.f32.vlgmr.msra.gmra.mxu3 %v250_v33  ;;  %378 = vmatpush.msra.mxu1 %v282_v31  ;;  %v187_v31 = vld [vmem:[%s805_s14 + $0x18] sm:$0xff] }
  0x2e   : > { %314 = vmatmul.f32.vlgmr.msra.gmra.mxu0 %v233_v34  ;;  %379 = vmatmul.f32.vlgmr.msra.gmra.mxu1 %v234_v35 }
  0x34   : > { %341 = vmatmul.f32.gmra.mxu2 %v251_v36  ;;  %v195_v36 = vld [vmem:[%s805_s14 + $0x58] sm:$0xff] }
  0x35   : > { %406 = vmatmul.f32.gmra.mxu3 %v252_v37 }
  0x36   : > { %317 = vmatmul.f32.gmra.mxu0 %v235_v38  ;;  %382 = vmatmul.f32.gmra.mxu1 %v236_v39 }
  0x3c   : > { %344 = vmatmul.f32.gmra.mxu2 %v253_v40 }
  0x3d   : > { %409 = vmatmul.f32.gmra.mxu3 %v254_v41  ;;  %v188_v41 = vld [vmem:[%s805_s14 + $0x20] sm:$0xff] }
  0x3e   : > { %320 = vmatmul.f32.gmra.mxu0 %v237_v42  ;;  %385 = vmatmul.f32.gmra.mxu1 %v238_v43 }
  0x44   : > { %347 = vmatmul.f32.gmra.mxu2 %v255_v44 }
  0x45   : > { %412 = vmatmul.f32.gmra.mxu3 %v256_v45 }
  0x46   : > { %323 = vmatmul.f32.gmra.mxu0 %v239_v46  ;;  %388 = vmatmul.f32.gmra.mxu1 %v240_v47  ;;  %v196_v46 = vld [vmem:[%s805_s14 + $0x60] sm:$0xff] }
  0x4c   : > { %350 = vmatmul.f32.gmra.mxu2 %v257_v48 }
  0x4d   : > { %415 = vmatmul.f32.gmra.mxu3 %v258_v49 }
  0x4e   : > { %326 = vmatmul.f32.gmra.mxu0 %v241_v50  ;;  %391 = vmatmul.f32.gmra.mxu1 %v242_v51  ;;  %v189_v51 = vld [vmem:[%s805_s14 + $0x28] sm:$0xff] }
  0x54   : > { %353 = vmatmul.f32.gmra.mxu2 %v259_v52 }
  0x55   : > { %418 = vmatmul.f32.gmra.mxu3 %v260_v53 }
  0x56   : > { %329 = vmatmul.f32.gmra.mxu0 %v243_v54  ;;  %394 = vmatmul.f32.gmra.mxu1 %v244_v55 }
  0x5c   : > { %356 = vmatmul.f32.gmra.mxu2 %v261_v56  ;;  %v197_v56 = vld [vmem:[%s805_s14 + $0x68] sm:$0xff] }
  0x5d   : > { %421 = vmatmul.f32.gmra.mxu3 %v262_v57 }
  0x5e   : > { %332 = vmatmul.f32.gmra.mxu0 %v245_v58  ;;  %397 = vmatmul.f32.gmra.mxu1 %v246_v59 }
  0x64   : > { %359 = vmatmul.f32.gmra.mxu2 %v263_v60 }
  0x65   : > { %424 = vmatmul.f32.gmra.mxu3 %v264_v61  ;;  %v190_v61 = vld [vmem:[%s805_s14 + $0x30] sm:$0xff] }
  0x66   : > { %335 = vmatmul.f32.gmra.mxu0 %v247_v62  ;;  %400 = vmatmul.f32.gmra.mxu1 %v248_v63 }
  0xab   : > { %v315_v0 = vpop.f32.mrf.mxu0  ;;  %v380_v2 = vpop.f32.mrf.mxu1 }
  0xac   : > { %v381_v3 = vadd.f32 %v380_v2, %v315_v0  ;;  %v198_v2 = vld [vmem:[%s805_s14 + $0x70] sm:$0xff] }
  0xae   : > { %v428_v4 = vadd.f32 %v381_v3, %v184_v1 }
  0xaf   : > { %v339_v5 = vpop.f32.mrf.mxu2 }
  0xb0   : > { %v404_v7 = vpop.f32.mrf.mxu3  ;;  %444 = vst [vmem:[%s812_s18] sm:$0xff] %v428_v4 }
  0xb1   : > { %v405_v8 = vadd.f32 %v404_v7, %v339_v5  ;;  %v191_v7 = vld [vmem:[%s805_s14 + $0x38] sm:$0xff] }
  0xb3   : > { %v436_v9 = vadd.f32 %v405_v8, %v192_v6  ;;  %v318_v10 = vpop.f32.mrf.mxu0  ;;  %v383_v12 = vpop.f32.mrf.mxu1 }
  0xb4   : > { %v384_v13 = vadd.f32 %v383_v12, %v318_v10  ;;  %v199_v12 = vld [vmem:[%s805_s14 + $0x78] sm:$0xff] }
  0xb5   : > { %452 = vst [vmem:[%s812_s18 + $0x40] sm:$0xff] %v436_v9 }
  0xb6   : > { %v429_v14 = vadd.f32 %v384_v13, %v185_v11 }
  0xb7   : > { %v342_v15 = vpop.f32.mrf.mxu2 }
  0xb8   : > { %v407_v17 = vpop.f32.mrf.mxu3  ;;  %445 = vst [vmem:[%s812_s18 + $0x8] sm:$0xff] %v429_v14 }
  0xb9   : > { %v408_v18 = vadd.f32 %v407_v17, %v342_v15 }
  0xbb   : > { %v437_v19 = vadd.f32 %v408_v18, %v193_v16  ;;  %v321_v20 = vpop.f32.mrf.mxu0  ;;  %v386_v22 = vpop.f32.mrf.mxu1 }
  0xbc   : > { %v387_v23 = vadd.f32 %v386_v22, %v321_v20 }
  0xbd   : > { %453 = vst [vmem:[%s812_s18 + $0x48] sm:$0xff] %v437_v19 }
  0xbe   : > { %v430_v24 = vadd.f32 %v387_v23, %v186_v21 }
  0xbf   : > { %v345_v25 = vpop.f32.mrf.mxu2 }
  0xc0   : > { %v410_v27 = vpop.f32.mrf.mxu3  ;;  %446 = vst [vmem:[%s812_s18 + $0x10] sm:$0xff] %v430_v24 }
  0xc1   : > { %v411_v28 = vadd.f32 %v410_v27, %v345_v25 }
  0xc3   : > { %v438_v29 = vadd.f32 %v411_v28, %v194_v26  ;;  %v324_v30 = vpop.f32.mrf.mxu0  ;;  %v389_v32 = vpop.f32.mrf.mxu1 }
  0xc4   : > { %v390_v33 = vadd.f32 %v389_v32, %v324_v30 }
  0xc5   : > { %454 = vst [vmem:[%s812_s18 + $0x50] sm:$0xff] %v438_v29 }
  0xc6   : > { %v431_v34 = vadd.f32 %v390_v33, %v187_v31 }
  0xc7   : > { %v348_v35 = vpop.f32.mrf.mxu2 }
  0xc8   : > { %v413_v37 = vpop.f32.mrf.mxu3  ;;  %447 = vst [vmem:[%s812_s18 + $0x18] sm:$0xff] %v431_v34 }
  0xc9   : > { %v414_v38 = vadd.f32 %v413_v37, %v348_v35 }
  0xcb   : > { %v439_v39 = vadd.f32 %v414_v38, %v195_v36  ;;  %v327_v40 = vpop.f32.mrf.mxu0  ;;  %v392_v42 = vpop.f32.mrf.mxu1 }
  0xcc   : > { %v393_v43 = vadd.f32 %v392_v42, %v327_v40 }
  0xcd   : > { %455 = vst [vmem:[%s812_s18 + $0x58] sm:$0xff] %v439_v39 }
  0xce   : > { %v432_v44 = vadd.f32 %v393_v43, %v188_v41 }
  0xcf   : > { %v351_v45 = vpop.f32.mrf.mxu2 }
  0xd0   : > { %v416_v47 = vpop.f32.mrf.mxu3  ;;  %448 = vst [vmem:[%s812_s18 + $0x20] sm:$0xff] %v432_v44 }
  0xd1   : > { %v417_v48 = vadd.f32 %v416_v47, %v351_v45 }
  0xd3   : > { %v440_v49 = vadd.f32 %v417_v48, %v196_v46  ;;  %v330_v50 = vpop.f32.mrf.mxu0  ;;  %v395_v52 = vpop.f32.mrf.mxu1 }
  0xd4   : > { %v396_v53 = vadd.f32 %v395_v52, %v330_v50 }
  0xd5   : > { %456 = vst [vmem:[%s812_s18 + $0x60] sm:$0xff] %v440_v49 }
  0xd6   : > { %v433_v54 = vadd.f32 %v396_v53, %v189_v51 }
  0xd7   : > { %v354_v55 = vpop.f32.mrf.mxu2 }
  0xd8   : > { %v419_v57 = vpop.f32.mrf.mxu3  ;;  %449 = vst [vmem:[%s812_s18 + $0x28] sm:$0xff] %v433_v54 }
  0xd9   : > { %v420_v58 = vadd.f32 %v419_v57, %v354_v55 }
  0xdb   : > { %v441_v59 = vadd.f32 %v420_v58, %v197_v56  ;;  %v333_v60 = vpop.f32.mrf.mxu0  ;;  %v398_v62 = vpop.f32.mrf.mxu1 }
  0xdc   : > { %v399_v63 = vadd.f32 %v398_v62, %v333_v60 }
  0xdd   : > { %457 = vst [vmem:[%s812_s18 + $0x68] sm:$0xff] %v441_v59 }
  0xde   : > { %v434_v0 = vadd.f32 %v399_v63, %v190_v61 }
  0xdf   : > { %v357_v1 = vpop.f32.mrf.mxu2 }
  0xe0   : > { %v422_v3 = vpop.f32.mrf.mxu3  ;;  %450 = vst [vmem:[%s812_s18 + $0x30] sm:$0xff] %v434_v0 }
  0xe1   : > { %v423_v4 = vadd.f32 %v422_v3, %v357_v1 }
  0xe3   : > { %v442_v5 = vadd.f32 %v423_v4, %v198_v2  ;;  %v336_v6 = vpop.f32.mrf.mxu0  ;;  %v401_v8 = vpop.f32.mrf.mxu1 }
  0xe4   : > { %v402_v9 = vadd.f32 %v401_v8, %v336_v6 }
  0xe5   : > { %458 = vst [vmem:[%s812_s18 + $0x70] sm:$0xff] %v442_v5 }
  0xe6   : > { %v435_v10 = vadd.f32 %v402_v9, %v191_v7 }
  0xe7   : > { %v360_v11 = vpop.f32.mrf.mxu2 }
  0xe8   : > { %v425_v13 = vpop.f32.mrf.mxu3  ;;  %451 = vst [vmem:[%s812_s18 + $0x38] sm:$0xff] %v435_v10 }
  0xe9   : > { %v426_v14 = vadd.f32 %v425_v13, %v360_v11 }
  0xeb   : > { %v443_v15 = vadd.f32 %v426_v14, %v199_v12 }
  0xed   : > { %459 = vst [vmem:[%s812_s18 + $0x78] sm:$0xff] %v443_v15 }
  0xee PF: > { %s12_s11 = sadd.s32 1, %s627_s11   ;;  %s857_s9 = smov %s623_s10 }
  0xef   : > { %p9_p5 = scmp.ge.s32.totalorder %s12_s11, 4   ;;  %s858_s10 = smov %s860_s12 }
  0xf1   :  { %11 = sbr.rel (!%p9_p5) target bundleno = 2 (0x2), region = 64 }

</bundles_post_ra>
